<compile_context>
chip_gen: v6e
topology: v6e:2x2x1
jax: 0.10.0
libtpu: 0.0.40
codegen_flags: <defaults>
</compile_context>

<pallas_src>
import functools

import jax
import jax.numpy as jnp
from jax.experimental import pallas as pl
from jax.experimental.pallas import tpu as pltpu


def _round_up(x, m):
    return (x + m - 1) // m * m


# ---------------------------------------------------------------------------
# Kernels (transposed orientation: features on sublanes, tokens on lanes)
# ---------------------------------------------------------------------------

def _logits_t(idx_row, emb_t_ref, w1_t_ref, w2_t_ref, b_ref, d_pad):
    """Shared transposed forward. Returns f32 logits_t of shape (V_pad, BT_pad).

    idx_row  : (1, BT_pad)       int32 (lane-dense token ids)
    emb_t_ref: (D_pad, V_pad)    bf16  (embedding table, transposed)
    w1_t_ref : (D_pad, D_pad)    bf16  (first Linear weight, transposed)
    w2_t_ref : (V_pad, D_pad)    bf16  (second Linear weight, transposed)
    b_ref    : (D_pad+V_pad, 1)  f32   (b1 rows then b2 rows, column vectors)
    """
    v_pad = emb_t_ref.shape[1]
    bt_pad = idx_row.shape[1]

    # Embedding lookup as a one-hot matmul on the MXU.  The one-hot is built
    # from a sublane iota compared against the lane-dense id row -> no
    # relayout, and the matmul stays in standard (M,K)@(K,N) orientation.
    vocab_iota = jax.lax.broadcasted_iota(jnp.int32, (v_pad, bt_pad), 0)
    oh_t = (vocab_iota == idx_row).astype(jnp.bfloat16)            # (V_pad, BT)
    x_t = jnp.dot(emb_t_ref[...], oh_t,
                  preferred_element_type=jnp.float32)              # (D_pad, BT)

    b1_col = b_ref[0:d_pad, :]                                     # (D_pad, 1)
    b2_col = b_ref[d_pad:d_pad + v_pad, :]                         # (V_pad, 1)

    # Linear(d_model, d_model) + ReLU
    h_t = jnp.dot(w1_t_ref[...], x_t.astype(jnp.bfloat16),
                  preferred_element_type=jnp.float32) + b1_col
    h_t = jnp.maximum(h_t, 0.0)

    # Linear(d_model, vocab_size)
    logits_t = jnp.dot(w2_t_ref[...], h_t.astype(jnp.bfloat16),
                       preferred_element_type=jnp.float32) + b2_col
    return logits_t                                                # (V_pad, BT)


def _fwd_kernel(ids_ref, emb_t_ref, w1_t_ref, w2_t_ref, b_ref,
                logits_t_ref, *, d_pad):
    logits_t_ref[...] = _logits_t(ids_ref[0:1, :], emb_t_ref, w1_t_ref,
                                  w2_t_ref, b_ref, d_pad)


def _fwd_loss_kernel(ids_ref, emb_t_ref, w1_t_ref, w2_t_ref, b_ref,
                     logits_t_ref, loss_ref, *, d_pad, vocab_size, n_valid):
    # ids_ref row 0 = token ids, row 1 = targets (both lane-dense).
    logits_t = _logits_t(ids_ref[0:1, :], emb_t_ref, w1_t_ref,
                         w2_t_ref, b_ref, d_pad)
    logits_t_ref[...] = logits_t

    v_pad, bt_pad = logits_t.shape
    tgt_row = ids_ref[1:2, :]                                      # (1, BT_pad)
    vocab_iota = jax.lax.broadcasted_iota(jnp.int32, (v_pad, bt_pad), 0)

    # Fused cross-entropy.  Padded vocab rows are exactly 0 in logits_t, so
    # they MUST be masked out of the softmax (finite "-inf" avoids inf*0).
    masked = jnp.where(vocab_iota < vocab_size, logits_t, -1e30)
    m = jnp.max(masked, axis=0, keepdims=True)                     # (1, BT)
    se = jnp.sum(jnp.exp(masked - m), axis=0, keepdims=True)       # (1, BT)
    lse = m + jnp.log(se)                                          # (1, BT)

    # Target logit gather via the same sublane iota (exactly one hit per col).
    tgt_logit = jnp.sum(jnp.where(vocab_iota == tgt_row, logits_t, 0.0),
                        axis=0, keepdims=True)                     # (1, BT)
    nll = lse - tgt_logit                                          # (1, BT)

    # Zero out BT-padding columns, then mean over the true BT rows.
    valid = jax.lax.broadcasted_iota(jnp.int32, (1, bt_pad), 1) < n_valid
    nll = jnp.where(valid, nll, 0.0)
    loss_ref[...] = jnp.sum(nll, axis=1, keepdims=True) * (1.0 / n_valid)


# ---------------------------------------------------------------------------
# Parameters & wrapper
# ---------------------------------------------------------------------------

def init_params(key, vocab_size, d_model):
    k_emb, k_w1, k_b1, k_w2, k_b2 = jax.random.split(key, 5)
    emb = jax.random.normal(k_emb, (vocab_size, d_model), jnp.float32)
    lim = 1.0 / (d_model ** 0.5)
    w1 = jax.random.uniform(k_w1, (d_model, d_model), jnp.float32, -lim, lim)
    b1 = jax.random.uniform(k_b1, (1, d_model), jnp.float32, -lim, lim)
    w2 = jax.random.uniform(k_w2, (d_model, vocab_size), jnp.float32, -lim, lim)
    b2 = jax.random.uniform(k_b2, (1, vocab_size), jnp.float32, -lim, lim)
    return {"emb": emb, "w1": w1, "b1": b1, "w2": w2, "b2": b2}


def pad_params(params):
    """One-time layout plumbing: transpose, lane-pad to 128, cast weights bf16."""
    v, d = params["emb"].shape
    v_pad = _round_up(v, 128)
    d_pad = _round_up(d, 128)
    emb_t = jnp.pad(params["emb"], ((0, v_pad - v), (0, d_pad - d))).T.astype(jnp.bfloat16)
    w1_t = jnp.pad(params["w1"], ((0, d_pad - d), (0, d_pad - d))).T.astype(jnp.bfloat16)
    w2_t = jnp.pad(params["w2"], ((0, d_pad - d), (0, v_pad - v))).T.astype(jnp.bfloat16)
    b1_col = jnp.pad(params["b1"], ((0, 0), (0, d_pad - d))).T          # (D_pad, 1) f32
    b2_col = jnp.pad(params["b2"], ((0, 0), (0, v_pad - v))).T          # (V_pad, 1) f32
    b_cols = jnp.concatenate([b1_col, b2_col], axis=0)                  # one operand
    return {"emb_t": emb_t, "w1_t": w1_t, "w2_t": w2_t, "b_cols": b_cols,
            "vocab_size": v, "d_model": d, "v_pad": v_pad, "d_pad": d_pad}


def simple_broken_model_forward(idx, pp, targets=None):
    b, t = idx.shape
    bt = b * t
    v = pp["vocab_size"]
    v_pad, d_pad = pp["v_pad"], pp["d_pad"]
    bt_pad = _round_up(bt, 128)

    # Layout plumbing: flatten to a lane-dense (1, BT_pad) int32 row.
    # Note: nn.Embedding raises on OOB ids; we clamp instead (documented
    # behavioral difference).
    idx_row = jnp.clip(idx.reshape(1, bt).astype(jnp.int32), 0, v - 1)
    idx_row = jnp.pad(idx_row, ((0, 0), (0, bt_pad - bt)))

    vmem = pl.BlockSpec(memory_space=pltpu.MemorySpace.VMEM)
    weights = (pp["emb_t"], pp["w1_t"], pp["w2_t"], pp["b_cols"])

    if targets is None:
        logits_t = pl.pallas_call(
            functools.partial(_fwd_kernel, d_pad=d_pad),
            out_shape=jax.ShapeDtypeStruct((v_pad, bt_pad), jnp.float32),
            in_specs=[vmem] * 5,
            out_specs=vmem,
        )(idx_row, *weights)
        # Single fused XLA copy (transpose + slice of padded rows + reshape).
        return logits_t[:v, :bt].T.reshape(b, t, v)

    # Targets path: loss is computed inside the kernel (no wrapper softmax).
    # Note: PyTorch cross_entropy errors on OOB targets; we clamp instead.
    tgt_row = jnp.clip(targets.reshape(1, bt).astype(jnp.int32), 0, v - 1)
    tgt_row = jnp.pad(tgt_row, ((0, 0), (0, bt_pad - bt)))
    ids = jnp.concatenate([idx_row, tgt_row], axis=0)                   # (2, BT_pad)

    logits_t, loss = pl.pallas_call(
        functools.partial(_fwd_loss_kernel, d_pad=d_pad,
                          vocab_size=v, n_valid=bt),
        out_shape=(jax.ShapeDtypeStruct((v_pad, bt_pad), jnp.float32),
                   jax.ShapeDtypeStruct((1, 1), jnp.float32)),
        in_specs=[vmem] * 5,
        out_specs=(vmem, vmem),
    )(ids, *weights)
    logits = logits_t[:v, :bt].T.reshape(b, t, v)
    return logits, loss[0, 0]


# ---------------------------------------------------------------------------
# Demo / self-check
# ---------------------------------------------------------------------------

if __name__ == "__main__":
    VOCAB_SIZE = 65       # small synthetic vocab
    D_MODEL = 32
    BATCH = 8             # MASTER_CONFIG['batch_size']
    CONTEXT = 16          # MASTER_CONFIG['context_window']

    key = jax.random.PRNGKey(0)
    k_params, k_idx, k_tgt = jax.random.split(key, 3)

    params = init_params(k_params, VOCAB_SIZE, D_MODEL)
    pp = pad_params(params)

    idx = jax.random.randint(k_idx, (BATCH, CONTEXT), 0, VOCAB_SIZE, jnp.int32)
    targets = jax.random.randint(k_tgt, (BATCH, CONTEXT), 0, VOCAB_SIZE, jnp.int32)

    # targets=None path (returns logits only), matching the PyTorch forward.
    logits = simple_broken_model_forward(idx, pp)
    logits = jax.block_until_ready(logits)
    assert logits.shape == (BATCH, CONTEXT, VOCAB_SIZE)

    # targets path (logits, loss) with the cross-entropy fused in the kernel.
    logits2, loss = simple_broken_model_forward(idx, pp, targets)
    jax.block_until_ready((logits2, loss))
    assert jnp.isfinite(loss)

    # Cross-check against a pure-f32 JAX reference (loose tolerance: MXU
    # inputs are bf16 with f32 accumulation).
    x_ref = params["emb"][idx]
    h_ref = jnp.maximum(x_ref @ params["w1"] + params["b1"][0], 0.0)
    logits_ref = h_ref @ params["w2"] + params["b2"][0]
    assert jnp.allclose(logits, logits_ref, atol=5e-2, rtol=5e-2)
    assert jnp.allclose(logits2, logits, atol=1e-5, rtol=1e-5)

    lp_ref = jax.nn.log_softmax(logits_ref.reshape(-1, VOCAB_SIZE), axis=-1)
    nll_ref = -jnp.take_along_axis(lp_ref, targets.reshape(-1, 1), axis=-1)
    loss_ref = jnp.mean(nll_ref)
    assert jnp.allclose(loss, loss_ref, atol=5e-2, rtol=5e-2)

    print("KERNEL_OK")
</pallas_src>

<mosaic_0001>
module attributes {stable_mosaic.version = 11 : i64} {
  func.func @_fwd_kernel(%arg0: memref<1x128xi32, #tpu.memory_space<vmem>>, %arg1: memref<128x128xbf16, #tpu.memory_space<vmem>>, %arg2: memref<128x128xbf16, #tpu.memory_space<vmem>>, %arg3: memref<128x128xbf16, #tpu.memory_space<vmem>>, %arg4: memref<256x1xf32, #tpu.memory_space<vmem>>, %arg5: memref<128x128xf32, #tpu.memory_space<vmem>>) attributes {dimension_semantics = [], scalar_prefetch = 0 : i64, scratch_operands = 0 : i64, tpu.core_type = #tpu.core_type<tc>} {
    %c0 = arith.constant 0 : index
    %c0_0 = arith.constant 0 : index
    %0 = vector.load %arg0[%c0, %c0_0] : memref<1x128xi32, #tpu.memory_space<vmem>>, vector<1x128xi32>
    %1 = tpu.iota {dimensions = array<i32: 0>} : vector<128x128xi32>
    %2 = vector.broadcast %0 : vector<1x128xi32> to vector<128x128xi32>
    %3 = arith.cmpi eq, %1, %2 : vector<128x128xi32>
    %4 = arith.extui %3 : vector<128x128xi1> to vector<128x128xi32>
    %5 = arith.sitofp %4 : vector<128x128xi32> to vector<128x128xf32>
    %6 = arith.truncf %5 : vector<128x128xf32> to vector<128x128xbf16>
    %c0_1 = arith.constant 0 : index
    %c0_2 = arith.constant 0 : index
    %7 = vector.load %arg1[%c0_1, %c0_2] : memref<128x128xbf16, #tpu.memory_space<vmem>>, vector<128x128xbf16>
    %cst = arith.constant dense<0.000000e+00> : vector<128x128xf32>
    %8 = tpu.matmul %7, %6, %cst {dimension_numbers = #tpu.dot_dimension_numbers<[1], [0], [0], [1], [0, 0, 1, 1], [], []>} : vector<128x128xbf16>, vector<128x128xbf16>, vector<128x128xf32> -> vector<128x128xf32>
    %c0_3 = arith.constant 0 : index
    %c0_4 = arith.constant 0 : index
    %9 = vector.load %arg4[%c0_3, %c0_4] : memref<256x1xf32, #tpu.memory_space<vmem>>, vector<128x1xf32>
    %c128 = arith.constant 128 : index
    %c0_5 = arith.constant 0 : index
    %10 = vector.load %arg4[%c128, %c0_5] : memref<256x1xf32, #tpu.memory_space<vmem>>, vector<128x1xf32>
    %c0_6 = arith.constant 0 : index
    %c0_7 = arith.constant 0 : index
    %11 = vector.load %arg2[%c0_6, %c0_7] : memref<128x128xbf16, #tpu.memory_space<vmem>>, vector<128x128xbf16>
    %12 = arith.truncf %8 : vector<128x128xf32> to vector<128x128xbf16>
    %cst_8 = arith.constant dense<0.000000e+00> : vector<128x128xf32>
    %13 = tpu.matmul %11, %12, %cst_8 {dimension_numbers = #tpu.dot_dimension_numbers<[1], [0], [0], [1], [0, 0, 1, 1], [], []>} : vector<128x128xbf16>, vector<128x128xbf16>, vector<128x128xf32> -> vector<128x128xf32>
    %14 = vector.broadcast %9 : vector<128x1xf32> to vector<128x128xf32>
    %15 = arith.addf %13, %14 : vector<128x128xf32>
    %cst_9 = arith.constant 0.000000e+00 : f32
    %16 = vector.broadcast %cst_9 : f32 to vector<128x128xf32>
    %17 = arith.maximumf %15, %16 : vector<128x128xf32>
    %c0_10 = arith.constant 0 : index
    %c0_11 = arith.constant 0 : index
    %18 = vector.load %arg3[%c0_10, %c0_11] : memref<128x128xbf16, #tpu.memory_space<vmem>>, vector<128x128xbf16>
    %19 = arith.truncf %17 : vector<128x128xf32> to vector<128x128xbf16>
    %cst_12 = arith.constant dense<0.000000e+00> : vector<128x128xf32>
    %20 = tpu.matmul %18, %19, %cst_12 {dimension_numbers = #tpu.dot_dimension_numbers<[1], [0], [0], [1], [0, 0, 1, 1], [], []>} : vector<128x128xbf16>, vector<128x128xbf16>, vector<128x128xf32> -> vector<128x128xf32>
    %21 = vector.broadcast %10 : vector<128x1xf32> to vector<128x128xf32>
    %22 = arith.addf %20, %21 : vector<128x128xf32>
    %c0_13 = arith.constant 0 : index
    %c0_14 = arith.constant 0 : index
    %23 = vector.load %arg5[%c0_13, %c0_14] : memref<128x128xf32, #tpu.memory_space<vmem>>, vector<128x128xf32>
    tpu.vector_store %arg5[%c0_13, %c0_14], %22 {strides = array<i32>} : memref<128x128xf32, #tpu.memory_space<vmem>>, vector<128x128xf32>,
    return
  }
}

</mosaic_0001>

<bundles_post_ra>
// kernel: tpu_custom_call.1
= control target key start
LH: loop header
LB: loop body
LE: loop exit
PB: predicated region body
PF: predicated region fallthrough
CT: control target
= control target key end

     0   :  { %v23_v0 = vlaneseq  ;;  %v1109_v12 = vmov 1.0|1.0   ;;  %s1330_s0 = inlined_call_operand.vmem [shape: s32[1,128], index: 0, kind: input, shape index: {}]   ;;  %s1331_s1 = inlined_call_operand.vmem [shape: bf16[128,128], index: 1, kind: input, shape index: {}]   ;;  %s1332_s2 = inlined_call_operand.vmem [shape: bf16[128,128], index: 2, kind: input, shape index: {}]   ;;  %s1333_s3 = inlined_call_operand.vmem [shape: bf16[128,128], index: 3, kind: input, shape index: {}]   ;;  %s1334_s4 = inlined_call_operand.vmem [shape: f32[256,1], index: 4, kind: input, shape index: {}]   ;;  %s1335_s5 = inlined_call_operand.hbm [shape: f32[128,128], index: 5, kind: output, shape index: {}]  }
   0x1   :  { %v839_v1 = vld [vmem:[%s1330_s0] ss:$0 sm:$0xff] }
   0x2   :  { %v1063_v2 = vld [vmem:[%s1331_s1] sm:$0xff]   ;;  %v24_v3 = vshrl.u32 %v23_v0, 7 }
   0x3   :  { %960 = vmatprep.mubr.bf16.mxu0 %v1063_v2 }
   0x4   :  { %v38_v4 = vadd.s32 112, %v24_v3  ;;  %v39_v5 = vadd.s32 120, %v24_v3  ;;  %v36_v6 = vadd.s32 96, %v24_v3  ;;  %v37_v7 = vadd.s32 104, %v24_v3 }
   0x5   :  { %v34_v8 = vadd.s32 80, %v24_v3  ;;  %v35_v9 = vadd.s32 88, %v24_v3  ;;  %v32_v10 = vadd.s32 64, %v24_v3  ;;  %v33_v11 = vadd.s32 72, %v24_v3 }
   0x6   :  { %vm58_vm0 = vcmp.eq.s32.totalorder %v38_v4, %v839_v1  ;;  %vm59_vm1 = vcmp.eq.s32.totalorder %v39_v5, %v839_v1  ;;  %vm56_vm2 = vcmp.eq.s32.totalorder %v36_v6, %v839_v1  ;;  %vm57_vm3 = vcmp.eq.s32.totalorder %v37_v7, %v839_v1 }
   0x7   :  { %vm864_vm4 = vmpackc.low %vm59_vm1, %vm58_vm0  ;;  %vm54_vm5 = vcmp.eq.s32.totalorder %v34_v8, %v839_v1  ;;  %vm55_vm6 = vcmp.eq.s32.totalorder %v35_v9, %v839_v1  ;;  %v30_v13 = vadd.s32 48, %v24_v3  ;;  %v31_v14 = vadd.s32 56, %v24_v3 }
   0x8   :  { %944 = vmatprep.subr.msk.bf16.mxu0 %vm864_vm4, %v1109_v12  ;;  %vm866_vm7 = vmpackc.low %vm57_vm3, %vm56_vm2  ;;  %v28_v15 = vadd.s32 32, %v24_v3  ;;  %v29_v16 = vadd.s32 40, %v24_v3  ;;  %vm52_vm8 = vcmp.eq.s32.totalorder %v32_v10, %v839_v1  ;;  %vm53_vm9 = vcmp.eq.s32.totalorder %v33_v11, %v839_v1 }
   0x9   :  { %945 = vmatpush3.bf16.msk.msra.mxu0 %vm864_vm4, %v1109_v12  ;;  %vm868_vm10 = vmpackc.low %vm55_vm6, %vm54_vm5  ;;  %vm50_vm11 = vcmp.eq.s32.totalorder %v30_v13, %v839_v1  ;;  %vm51_vm12 = vcmp.eq.s32.totalorder %v31_v14, %v839_v1  ;;  %v26_v17 = vadd.s32 16, %v24_v3  ;;  %v27_v18 = vadd.s32 24, %v24_v3 }
   0xa   :  { %946 = vmatprep.subr.msk.bf16.mxu0 %vm866_vm7, %v1109_v12  ;;  %vm48_vm13 = vcmp.eq.s32.totalorder %v28_v15, %v839_v1  ;;  %vm49_vm14 = vcmp.eq.s32.totalorder %v29_v16, %v839_v1  ;;  %vm870_vm15 = vmpackc.low %vm53_vm9, %vm52_vm8 }
   0xb   :  { %vm872_vm0 = vmpackc.low %vm51_vm12, %vm50_vm11 }
   0xc   :  { %vm874_vm1 = vmpackc.low %vm49_vm14, %vm48_vm13 }
   0xd   :  { %947 = vmatpush3.bf16.msk.msra.mxu0 %vm866_vm7, %v1109_v12 }
   0xe   :  { %948 = vmatprep.subr.msk.bf16.mxu0 %vm868_vm10, %v1109_v12 }
  0x11   :  { %949 = vmatpush3.bf16.msk.msra.mxu0 %vm868_vm10, %v1109_v12 }
  0x12   :  { %950 = vmatprep.subr.msk.bf16.mxu0 %vm870_vm15, %v1109_v12 }
  0x15   :  { %951 = vmatpush3.bf16.msk.msra.mxu0 %vm870_vm15, %v1109_v12 }
  0x16   :  { %952 = vmatprep.subr.msk.bf16.mxu0 %vm872_vm0, %v1109_v12 }
  0x17   :  { %10 = vsyncpa [#allocation3], 0  ;;  %vm46_vm2 = vcmp.eq.s32.totalorder %v26_v17, %v839_v1  ;;  %vm47_vm3 = vcmp.eq.s32.totalorder %v27_v18, %v839_v1  ;;  %v25_v19 = vadd.s32 8, %v24_v3  ;;  %vm44_vm5 = vcmp.eq.s32.totalorder %v24_v3, %v839_v1  ;;  %v1064_v20 = vld [vmem:[%s1331_s1 + $0x8] sm:$0xff]   ;;  %v1065_v21 = vld [vmem:[%s1331_s1 + $0x10] sm:$0xff]  }
  0x18   :  { %vm876_vm4 = vmpackc.low %vm47_vm3, %vm46_vm2  ;;  %v1066_v22 = vld [vmem:[%s1331_s1 + $0x18] sm:$0xff]   ;;  %v1067_v23 = vld [vmem:[%s1331_s1 + $0x20] sm:$0xff]   ;;  %v1110_v30 = vmov 0  }
  0x19   :  { %953 = vmatpush3.bf16.msk.msra.mxu0 %vm872_vm0, %v1109_v12  ;;  %vm45_vm6 = vcmp.eq.s32.totalorder %v25_v19, %v839_v1  ;;  %v1068_v24 = vld [vmem:[%s1331_s1 + $0x28] sm:$0xff]   ;;  %v1069_v25 = vld [vmem:[%s1331_s1 + $0x30] sm:$0xff]   ;;  %v1070_v26 = vld [vmem:[%s1331_s1 + $0x38] sm:$0xff]   ;;  %1061 = vset.pattern.permute.xlu0 %v1110_v30 }
  0x1a   :  { %954 = vmatprep.subr.msk.bf16.mxu0 %vm874_vm1, %v1109_v12  ;;  %vm878_vm7 = vmpackc.low %vm45_vm6, %vm44_vm5  ;;  %v1071_v27 = vld [vmem:[%s1332_s2] sm:$0xff]   ;;  %v275_v28 = vld [vmem:[%s1334_s4 + $0x70] sm:$0xff]  ;;  %1062 = vset.pattern.permute.xlu1 %v1110_v30 }
  0x1b   :  { %992 = vmatprep.mubr.bf16.mxu1 %v1071_v27  ;;  %v273_v29 = vld [vmem:[%s1334_s4 + $0x60] sm:$0xff]  ;;  %389 = vperm.xlu0 %1061, %v275_v28   ;;  %v276_v31 = vld [vmem:[%s1334_s4 + $0x78] sm:$0xff]  ;;  %v274_v32 = vld [vmem:[%s1334_s4 + $0x68] sm:$0xff] }
  0x1c   :  { %379 = vperm.xlu1 %1062, %v273_v29   ;;  %v271_v33 = vld [vmem:[%s1334_s4 + $0x50] sm:$0xff]  ;;  %v272_v34 = vld [vmem:[%s1334_s4 + $0x58] sm:$0xff]  ;;  %v269_v35 = vld [vmem:[%s1334_s4 + $0x40] sm:$0xff] }
  0x1d   :  { %955 = vmatpush3.bf16.msk.msra.mxu0 %vm874_vm1, %v1109_v12  ;;  %v270_v36 = vld [vmem:[%s1334_s4 + $0x48] sm:$0xff]  ;;  %v267_v37 = vld [vmem:[%s1334_s4 + $0x30] sm:$0xff]  ;;  %v268_v38 = vld [vmem:[%s1334_s4 + $0x38] sm:$0xff] }
  0x1e   :  { %956 = vmatprep.subr.msk.bf16.mxu0 %vm876_vm4, %v1109_v12  ;;  %v265_v39 = vld [vmem:[%s1334_s4 + $0x20] sm:$0xff]  ;;  %v266_v40 = vld [vmem:[%s1334_s4 + $0x28] sm:$0xff]  ;;  %v263_v41 = vld [vmem:[%s1334_s4 + $0x10] sm:$0xff] }
  0x1f   :  { %394 = vperm.xlu0 %1061, %v276_v31   ;;  %v264_v42 = vld [vmem:[%s1334_s4 + $0x18] sm:$0xff]  ;;  %v261_v43 = vld [vmem:[%s1334_s4] sm:$0xff]  ;;  %v262_v44 = vld [vmem:[%s1334_s4 + $0x8] sm:$0xff] }
  0x20   :  { %384 = vperm.xlu1 %1062, %v274_v32   ;;  %v277_v45 = vld [vmem:[%s1334_s4 + $0x80] sm:$0xff]  ;;  %v278_v46 = vld [vmem:[%s1334_s4 + $0x88] sm:$0xff]  ;;  %v279_v47 = vld [vmem:[%s1334_s4 + $0x90] sm:$0xff] }
  0x21   :  { %957 = vmatpush3.bf16.msk.msra.mxu0 %vm876_vm4, %v1109_v12  ;;  %v280_v48 = vld [vmem:[%s1334_s4 + $0x98] sm:$0xff]  ;;  %v281_v49 = vld [vmem:[%s1334_s4 + $0xa0] sm:$0xff]  ;;  %v282_v50 = vld [vmem:[%s1334_s4 + $0xa8] sm:$0xff] }
  0x22   :  { %958 = vmatprep.subr.msk.bf16.mxu0 %vm878_vm7, %v1109_v12  ;;  %v283_v53 = vld [vmem:[%s1334_s4 + $0xb0] sm:$0xff]  ;;  %v284_v54 = vld [vmem:[%s1334_s4 + $0xb8] sm:$0xff]  ;;  %v285_v57 = vld [vmem:[%s1334_s4 + $0xc0] sm:$0xff] }
  0x23   :  { %369 = vperm.xlu0 %1061, %v271_v33   ;;  %v286_v58 = vld [vmem:[%s1334_s4 + $0xc8] sm:$0xff]  ;;  %v287_v61 = vld [vmem:[%s1334_s4 + $0xd0] sm:$0xff]  ;;  %v288_v62 = vld [vmem:[%s1334_s4 + $0xd8] sm:$0xff] }
  0x24   :  { %374 = vperm.xlu1 %1062, %v272_v34   ;;  %v289_v1 = vld [vmem:[%s1334_s4 + $0xe0] sm:$0xff]  ;;  %v290_v2 = vld [vmem:[%s1334_s4 + $0xe8] sm:$0xff]  ;;  %v291_v5 = vld [vmem:[%s1334_s4 + $0xf0] sm:$0xff] }
  0x25   :  { %959 = vmatpush3.bf16.msk.msra.mxu0 %vm878_vm7, %v1109_v12  ;;  %v292_v6 = vld [vmem:[%s1334_s4 + $0xf8] sm:$0xff]  ;;  %v1079_v28 = vld [vmem:[%s1333_s3] sm:$0xff]  }
  0x26   :  { %v1078_v27 = vld [vmem:[%s1332_s2 + $0x38] sm:$0xff]   ;;  %v1080_v29 = vld [vmem:[%s1333_s3 + $0x20] sm:$0xff]  }
  0x27   :  { %359 = vperm.xlu0 %1061, %v269_v35  }
  0x28   :  { %961 = vmatmul.mubr.bf16.vlgmr.msra.gmra.mxu0 %v1064_v20  ;;  %364 = vperm.xlu1 %1062, %v270_v36  }
  0x29   :  { %964 = vmatprep.mubr.bf16.mxu0 %v1065_v21  ;;  %v1072_v21 = vld [vmem:[%s1332_s2 + $0x8] sm:$0xff]  }
  0x2b   :  { %349 = vperm.xlu0 %1061, %v267_v37  }
  0x2c   :  { %354 = vperm.xlu1 %1062, %v268_v38  }
  0x2f   :  { %339 = vperm.xlu0 %1061, %v265_v39  }
  0x30   :  { %965 = vmatmul.mubr.bf16.gmra.mxu0 %v1066_v22  ;;  %344 = vperm.xlu1 %1062, %v266_v40   ;;  %v1073_v22 = vld [vmem:[%s1332_s2 + $0x10] sm:$0xff]  }
  0x31   :  { %968 = vmatprep.mubr.bf16.mxu0 %v1067_v23  ;;  %v1074_v23 = vld [vmem:[%s1332_s2 + $0x18] sm:$0xff]  }
  0x33   :  { %329 = vperm.xlu0 %1061, %v263_v41  }
  0x34   :  { %334 = vperm.xlu1 %1062, %v264_v42  }
  0x37   :  { %319 = vperm.xlu0 %1061, %v261_v43  }
  0x38   :  { %969 = vmatmul.mubr.bf16.gmra.mxu0 %v1068_v24  ;;  %324 = vperm.xlu1 %1062, %v262_v44   ;;  %v1075_v24 = vld [vmem:[%s1332_s2 + $0x20] sm:$0xff]  }
  0x39   :  { %972 = vmatprep.mubr.bf16.mxu0 %v1069_v25  ;;  %v1076_v25 = vld [vmem:[%s1332_s2 + $0x28] sm:$0xff]  }
  0x3b   :  { %584 = vperm.xlu0 %1061, %v277_v45  }
  0x3c   :  { %589 = vperm.xlu1 %1062, %v278_v46  }
  0x3f   :  { %594 = vperm.xlu0 %1061, %v279_v47  }
  0x40   :  { %973 = vmatmul.mubr.bf16.gmra.mxu0 %v1070_v26  ;;  %599 = vperm.xlu1 %1062, %v280_v48   ;;  %v1077_v26 = vld [vmem:[%s1332_s2 + $0x30] sm:$0xff]  }
  0x41   :  { %1024 = vmatprep.mubr.bf16.mxu0 %v1079_v28 }
  0x43   :  { %604 = vperm.xlu0 %1061, %v281_v49  }
  0x44   :  { %609 = vperm.xlu1 %1062, %v282_v50  }
  0x47   :  { %614 = vperm.xlu0 %1061, %v283_v53  }
  0x48   :  { %619 = vperm.xlu1 %1062, %v284_v54  }
  0x4b   :  { %624 = vperm.xlu0 %1061, %v285_v57  }
  0x4c   :  { %629 = vperm.xlu1 %1062, %v286_v58  }
  0x4f   :  { %634 = vperm.xlu0 %1061, %v287_v61  }
  0x50   :  { %639 = vperm.xlu1 %1062, %v288_v62  }
  0x53   :  { %644 = vperm.xlu0 %1061, %v289_v1  }
  0x54   :  { %649 = vperm.xlu1 %1062, %v290_v2  }
  0x57   :  { %654 = vperm.xlu0 %1061, %v291_v5  }
  0x58   :  { %659 = vperm.xlu1 %1062, %v292_v6  }
  0x96   :  { %v390_v36 = vpop.permute.xlu0 %389 }
  0x97   :  { %v380_v34 = vpop.permute.xlu1 %379 }
  0x9a   :  { %v395_v41 = vpop.permute.xlu0 %394 }
  0x9b   :  { %v385_v39 = vpop.permute.xlu1 %384 }
  0x9e   :  { %v370_v46 = vpop.permute.xlu0 %369 }
  0x9f   :  { %v375_v44 = vpop.permute.xlu1 %374 }
  0xa3   :  { %v365_v49 = vpop.permute.xlu1 %364 }
  0xa7   :  { %v355_v61 = vpop.permute.xlu1 %354 }
  0xe8   :  { %v962_v51 = vpop.f32.mrf.mxu0 }
  0xea   :  { %v198_v52 = vpop.f32.mrf.mxu0 }
  0xec   :  { %v963_v55 = vpop.f32.mrf.mxu0 }
  0xed   :  { %v310_v19 = vpack.c.bf16 %v963_v55, %v962_v51 }
  0xee   :  { %v201_v56 = vpop.f32.mrf.mxu0 }
  0xef   :  { %v309_v20 = vpack.c.bf16 %v201_v56, %v198_v52  ;;  %v360_v52 = vpop.permute.xlu0 %359 }
  0xf0   :  { %v966_v59 = vpop.f32.mrf.mxu0 }
  0xf2   :  { %v214_v60 = vpop.f32.mrf.mxu0 }
  0xf3   :  { %v350_v2 = vpop.permute.xlu0 %349 }
  0xf4   :  { %v967_v63 = vpop.f32.mrf.mxu0 }
  0xf5   :  { %v312_v17 = vpack.c.bf16 %v967_v63, %v966_v59 }
  0xf6   :  { %v217_v0 = vpop.f32.mrf.mxu0 }
  0xf7   :  { %v311_v18 = vpack.c.bf16 %v217_v0, %v214_v60 }
  0xf8   :  { %v970_v3 = vpop.f32.mrf.mxu0 }
  0xfa   :  { %v230_v4 = vpop.f32.mrf.mxu0 }
  0xfc   :  { %v971_v7 = vpop.f32.mrf.mxu0 }
  0xfd   :  { %v314_v15 = vpack.c.bf16 %v971_v7, %v970_v3 }
  0xfe   :  { %v233_v8 = vpop.f32.mrf.mxu0 }
  0xff   :  { %v313_v16 = vpack.c.bf16 %v233_v8, %v230_v4  ;;  %v345_v8 = vpop.permute.xlu1 %344 }
 0x100   :  { %v974_v9 = vpop.f32.mrf.mxu0 }
 0x102   :  { %v246_v10 = vpop.f32.mrf.mxu0 }
 0x104   :  { %v975_v11 = vpop.f32.mrf.mxu0 }
 0x105   :  { %v316_v12 = vpack.c.bf16 %v975_v11, %v974_v9 }
 0x106   :  { %v249_v13 = vpop.f32.mrf.mxu0 }
 0x107   :  { %v315_v14 = vpack.c.bf16 %v249_v13, %v246_v10  ;;  %976 = vmatprep.subr.bf16.mxu1 %v316_v12 }
 0x108   :  { %977 = vmatpush3.bf16.msra.mxu1 %v316_v12  ;;  %v340_v12 = vpop.permute.xlu0 %339 }
 0x109   :  { %978 = vmatprep.subr.bf16.mxu1 %v315_v14 }
 0x10c   :  { %979 = vmatpush3.bf16.msra.mxu1 %v315_v14 }
 0x10d   :  { %980 = vmatprep.subr.bf16.mxu1 %v314_v15 }
 0x110   :  { %981 = vmatpush3.bf16.msra.mxu1 %v314_v15 }
 0x111   :  { %982 = vmatprep.subr.bf16.mxu1 %v313_v16 }
 0x114   :  { %983 = vmatpush3.bf16.msra.mxu1 %v313_v16 }
 0x115   :  { %984 = vmatprep.subr.bf16.mxu1 %v312_v17 }
 0x118   :  { %985 = vmatpush3.bf16.msra.mxu1 %v312_v17 }
 0x119   :  { %986 = vmatprep.subr.bf16.mxu1 %v311_v18 }
 0x11c   :  { %987 = vmatpush3.bf16.msra.mxu1 %v311_v18  ;;  %v335_v18 = vpop.permute.xlu1 %334 }
 0x11d   :  { %988 = vmatprep.subr.bf16.mxu1 %v310_v19 }
 0x120   :  { %989 = vmatpush3.bf16.msra.mxu1 %v310_v19 }
 0x121   :  { %990 = vmatprep.subr.bf16.mxu1 %v309_v20 }
 0x124   :  { %991 = vmatpush3.bf16.msra.mxu1 %v309_v20 }
 0x127   :  { %993 = vmatmul.mubr.bf16.vlgmr.msra.gmra.mxu1 %v1072_v21  ;;  %v330_v21 = vpop.permute.xlu0 %329 }
 0x128   :  { %996 = vmatprep.mubr.bf16.mxu1 %v1073_v22 }
 0x12f   :  { %997 = vmatmul.mubr.bf16.gmra.mxu1 %v1074_v23 }
 0x130   :  { %1000 = vmatprep.mubr.bf16.mxu1 %v1075_v24 }
 0x137   :  { %1001 = vmatmul.mubr.bf16.gmra.mxu1 %v1076_v25 }
 0x138   :  { %1004 = vmatprep.mubr.bf16.mxu1 %v1077_v26 }
 0x13f   :  { %1005 = vmatmul.mubr.bf16.gmra.mxu1 %v1078_v27  ;;  %v325_v27 = vpop.permute.xlu1 %324 }
 0x140   :  { %1032 = vmatprep.mubr.bf16.mxu1 %v1080_v29 }
 0x1e7   :  { %v1297_v30 = vpop.f32.mrf.mxu1 }
 0x1e8   :  { %v488_v25 = vadd.f32 %v1297_v30, %v330_v21 }
 0x1e9   :  { %v1299_v31 = vpop.f32.mrf.mxu1 }
 0x1eb   :  { %v1301_v32 = vpop.f32.mrf.mxu1 }
 0x1ec   :  { %v491_v22 = vadd.f32 %v1301_v32, %v335_v18 }
 0x1ed   :  { %v1303_v33 = vpop.f32.mrf.mxu1 }
 0x1ee   :  { %v545_v28 = vmax.f32 %v491_v22, 0.0  ;;  %v483_v29 = vadd.f32 %v1303_v33, %v325_v27  ;;  %v1081_v33 = vld [vmem:[%s1333_s3 + $0x8] sm:$0xff]  }
 0x1ef   :  { %v998_v35 = vpop.f32.mrf.mxu1 }
 0x1f0   :  { %v504_v13 = vadd.f32 %v998_v35, %v350_v2  ;;  %v320_v35 = vpop.permute.xlu0 %319 }
 0x1f1   :  { %v495_v37 = vpop.f32.mrf.mxu1  ;;  %v480_v32 = vadd.f32 %v1299_v31, %v320_v35  ;;  %v1082_v31 = vld [vmem:[%s1333_s3 + $0x28] sm:$0xff]  }
 0x1f2   :  { %v548_v19 = vmax.f32 %v504_v13, 0.0  ;;  %v496_v20 = vadd.f32 %v495_v37, %v340_v12 }
 0x1f3   :  { %v999_v38 = vpop.f32.mrf.mxu1  ;;  %v542_v30 = vmax.f32 %v480_v32, 0.0 }
 0x1f4   :  { %v507_v9 = vadd.f32 %v999_v38, %v355_v61  ;;  %v546_v26 = vmax.f32 %v496_v20, 0.0  ;;  %v543_v38 = vmax.f32 %v483_v29, 0.0 }
 0x1f5   :  { %v498_v40 = vpop.f32.mrf.mxu1 }
 0x1f6   :  { %v549_v15 = vmax.f32 %v507_v9, 0.0  ;;  %v499_v16 = vadd.f32 %v498_v40, %v345_v8  ;;  %v1083_v40 = vld [vmem:[%s1333_s3 + $0x10] sm:$0xff]  }
 0x1f7   :  { %v1002_v42 = vpop.f32.mrf.mxu1 }
 0x1f8   :  { %v520_v62 = vadd.f32 %v1002_v42, %v370_v46  ;;  %v577_v23 = vpack.c.bf16 %v549_v15, %v548_v19  ;;  %v547_v24 = vmax.f32 %v499_v16, 0.0  ;;  %v1085_v42 = vld [vmem:[%s1333_s3 + $0x18] sm:$0xff]  }
 0x1f9   :  { %v511_v43 = vpop.f32.mrf.mxu1 }
 0x1fa   :  { %v552_v6 = vmax.f32 %v520_v62, 0.0  ;;  %v512_v7 = vadd.f32 %v511_v43, %v360_v52  ;;  %v1086_v43 = vld [vmem:[%s1333_s3 + $0x38] sm:$0xff]  }
 0x1fb   :  { %v1003_v45 = vpop.f32.mrf.mxu1 }
 0x1fc   :  { %v523_v57 = vadd.f32 %v1003_v45, %v375_v44  ;;  %v550_v14 = vmax.f32 %v512_v7, 0.0  ;;  %v585_v44 = vpop.permute.xlu0 %584  ;;  %v590_v45 = vpop.permute.xlu1 %589 }
 0x1fd   :  { %v514_v47 = vpop.f32.mrf.mxu1 }
 0x1fe   :  { %v553_v3 = vmax.f32 %v523_v57, 0.0  ;;  %v515_v4 = vadd.f32 %v514_v47, %v365_v49 }
 0x1ff   :  { %v1006_v48 = vpop.f32.mrf.mxu1 }
 0x200   :  { %v536_v51 = vadd.f32 %v1006_v48, %v390_v36  ;;  %v579_v10 = vpack.c.bf16 %v553_v3, %v552_v6  ;;  %v551_v11 = vmax.f32 %v515_v4, 0.0  ;;  %v544_v36 = vmax.f32 %v488_v25, 0.0  ;;  %v595_v46 = vpop.permute.xlu0 %594  ;;  %v600_v47 = vpop.permute.xlu1 %599 }
 0x201   :  { %v527_v50 = vpop.f32.mrf.mxu1 }
 0x202   :  { %v528_v54 = vadd.f32 %v527_v50, %v380_v34  ;;  %v556_v58 = vmax.f32 %v536_v51, 0.0  ;;  %v578_v17 = vpack.c.bf16 %v551_v11, %v550_v14  ;;  %v576_v34 = vpack.c.bf16 %v547_v24, %v546_v26 }
 0x203   :  { %v1007_v53 = vpop.f32.mrf.mxu1  ;;  %v575_v37 = vpack.c.bf16 %v545_v28, %v544_v36 }
 0x204   :  { %v539_v55 = vadd.f32 %v1007_v53, %v395_v41  ;;  %v554_v63 = vmax.f32 %v528_v54, 0.0  ;;  %v1084_v41 = vld [vmem:[%s1333_s3 + $0x30] sm:$0xff]   ;;  %v605_v48 = vpop.permute.xlu0 %604  ;;  %v610_v49 = vpop.permute.xlu1 %609  ;;  %s1111_s3 = smov [#allocation2]  }
 0x205   :  { %v530_v56 = vpop.f32.mrf.mxu1  ;;  %s828_s21 = sshll.u32 %s1111_s3, 4  ;;  %s829_s21 = int_to_ptr.vmem [resolvable:$true] %s828_s21 }
 0x206   :  { %v557_v59 = vmax.f32 %v539_v55, 0.0  ;;  %v531_v60 = vadd.f32 %v530_v56, %v385_v39  ;;  %v574_v39 = vpack.c.bf16 %v543_v38, %v542_v30  ;;  %s1087_s0 = scalar_lea.vmem %s829_s21, 2048  ;;  %p1092_p1 = scmp.lt.s32.totalorder %s829_s21, %s829_s21 }
 0x207   :  { %p1088_p0 = scmp.ne.s32.totalorder %s829_s21, %s1087_s0  ;;  %p1093_p2 = scmp.lt.s32.totalorder %s1087_s0, %s1087_s0 }
 0x208   :  { %v581_v0 = vpack.c.bf16 %v557_v59, %v556_v58  ;;  %v555_v1 = vmax.f32 %v531_v60, 0.0  ;;  %v615_v50 = vpop.permute.xlu0 %614  ;;  %v620_v51 = vpop.permute.xlu1 %619 }
 0x209   :  { %p1094_p3 = por %p1093_p2, %p1092_p1 }
 0x20a   :  { %v580_v5 = vpack.c.bf16 %v555_v1, %v554_v63  ;;  %1008 = vmatprep.subr.bf16.mxu0 %v581_v0  ;;  %1040 = vmatprep.subr.bf16.mxu1 %v581_v0 }
 0x20b   :  { %1009 = vmatpush3.bf16.msra.mxu0 %v581_v0  ;;  %1048 = vmatpush3.bf16.msra.mxu1 %v581_v0  ;;  %p1095_p4 = pnand %p1094_p3, %p1088_p0 }
 0x20c   :  { %1010 = vmatprep.subr.bf16.mxu0 %v580_v5  ;;  %1041 = vmatprep.subr.bf16.mxu1 %v580_v5  ;;  %v625_v52 = vpop.permute.xlu0 %624  ;;  %v630_v53 = vpop.permute.xlu1 %629 }
 0x20f   :  { %1011 = vmatpush3.bf16.msra.mxu0 %v580_v5  ;;  %1049 = vmatpush3.bf16.msra.mxu1 %v580_v5 }
 0x210   :  { %1012 = vmatprep.subr.bf16.mxu0 %v579_v10  ;;  %1042 = vmatprep.subr.bf16.mxu1 %v579_v10  ;;  %v635_v54 = vpop.permute.xlu0 %634  ;;  %v640_v55 = vpop.permute.xlu1 %639 }
 0x213   :  { %1013 = vmatpush3.bf16.msra.mxu0 %v579_v10  ;;  %1050 = vmatpush3.bf16.msra.mxu1 %v579_v10 }
 0x214   :  { %1014 = vmatprep.subr.bf16.mxu0 %v578_v17  ;;  %1043 = vmatprep.subr.bf16.mxu1 %v578_v17  ;;  %v645_v58 = vpop.permute.xlu0 %644  ;;  %v650_v3 = vpop.permute.xlu1 %649 }
 0x217   :  { %1015 = vmatpush3.bf16.msra.mxu0 %v578_v17  ;;  %1051 = vmatpush3.bf16.msra.mxu1 %v578_v17 }
 0x218   :  { %1016 = vmatprep.subr.bf16.mxu0 %v577_v23  ;;  %1044 = vmatprep.subr.bf16.mxu1 %v577_v23  ;;  %v655_v8 = vpop.permute.xlu0 %654  ;;  %v660_v17 = vpop.permute.xlu1 %659 }
 0x21b   :  { %1017 = vmatpush3.bf16.msra.mxu0 %v577_v23  ;;  %1052 = vmatpush3.bf16.msra.mxu1 %v577_v23 }
 0x21c   :  { %1018 = vmatprep.subr.bf16.mxu0 %v576_v34  ;;  %1045 = vmatprep.subr.bf16.mxu1 %v576_v34 }
 0x21f   :  { %1019 = vmatpush3.bf16.msra.mxu0 %v576_v34  ;;  %1053 = vmatpush3.bf16.msra.mxu1 %v576_v34 }
 0x220   :  { %1020 = vmatprep.subr.bf16.mxu0 %v575_v37  ;;  %1046 = vmatprep.subr.bf16.mxu1 %v575_v37 }
 0x223   :  { %1021 = vmatpush3.bf16.msra.mxu0 %v575_v37  ;;  %1054 = vmatpush3.bf16.msra.mxu1 %v575_v37 }
 0x224   :  { %1022 = vmatprep.subr.bf16.mxu0 %v574_v39  ;;  %1047 = vmatprep.subr.bf16.mxu1 %v574_v39 }
 0x227   :  { %1023 = vmatpush3.bf16.msra.mxu0 %v574_v39  ;;  %1055 = vmatpush3.bf16.msra.mxu1 %v574_v39 }
 0x22a   :  { %1025 = vmatmul.mubr.bf16.vlgmr.msra.gmra.mxu0 %v1081_v33  ;;  %1033 = vmatmul.mubr.bf16.vlgmr.msra.gmra.mxu1 %v1082_v31 }
 0x22b   :  { %1028 = vmatprep.mubr.bf16.mxu0 %v1083_v40  ;;  %1036 = vmatprep.mubr.bf16.mxu1 %v1084_v41 }
 0x232   :  { %1029 = vmatmul.mubr.bf16.gmra.mxu0 %v1085_v42  ;;  %1037 = vmatmul.mubr.bf16.gmra.mxu1 %v1086_v43 }
 0x2ea   :  { %v1026_v56 = vpop.f32.mrf.mxu0  ;;  %v1034_v57 = vpop.f32.mrf.mxu1 }
 0x2eb   :  { %v753_v59 = vadd.f32 %v1026_v56, %v595_v46  ;;  %v785_v60 = vadd.f32 %v1034_v57, %v635_v54 }
 0x2ec   :  { %v744_v61 = vpop.f32.mrf.mxu0  ;;  %v776_v62 = vpop.f32.mrf.mxu1 }
 0x2ed   :  { %809 = vst [vmem:[#allocation2 + $0x10] sm:$0xff] %v753_v59  ;;  %817 = vst [vmem:[#allocation2 + $0x50] sm:$0xff] %v785_v60  ;;  %v745_v63 = vadd.f32 %v744_v61, %v585_v44  ;;  %v777_v0 = vadd.f32 %v776_v62, %v625_v52 }
 0x2ee   :  { %v1027_v1 = vpop.f32.mrf.mxu0  ;;  %v1035_v2 = vpop.f32.mrf.mxu1 }
 0x2ef   :  { %807 = vst [vmem:[#allocation2] sm:$0xff] %v745_v63  ;;  %815 = vst [vmem:[#allocation2 + $0x40] sm:$0xff] %v777_v0  ;;  %v756_v4 = vadd.f32 %v1027_v1, %v600_v47  ;;  %v788_v5 = vadd.f32 %v1035_v2, %v640_v55 }
 0x2f0   :  { %v747_v6 = vpop.f32.mrf.mxu0  ;;  %v779_v7 = vpop.f32.mrf.mxu1 }
 0x2f1   :  { %810 = vst [vmem:[#allocation2 + $0x18] sm:$0xff] %v756_v4  ;;  %818 = vst [vmem:[#allocation2 + $0x58] sm:$0xff] %v788_v5  ;;  %v748_v9 = vadd.f32 %v747_v6, %v590_v45  ;;  %v780_v10 = vadd.f32 %v779_v7, %v630_v53 }
 0x2f2   :  { %v1030_v11 = vpop.f32.mrf.mxu0  ;;  %v1038_v12 = vpop.f32.mrf.mxu1 }
 0x2f3   :  { %808 = vst [vmem:[#allocation2 + $0x8] sm:$0xff] %v748_v9  ;;  %816 = vst [vmem:[#allocation2 + $0x48] sm:$0xff] %v780_v10  ;;  %v769_v13 = vadd.f32 %v1030_v11, %v615_v50  ;;  %v801_v14 = vadd.f32 %v1038_v12, %v655_v8 }
 0x2f4   :  { %v760_v15 = vpop.f32.mrf.mxu0  ;;  %v792_v16 = vpop.f32.mrf.mxu1 }
 0x2f5   :  { %813 = vst [vmem:[#allocation2 + $0x30] sm:$0xff] %v769_v13  ;;  %821 = vst [vmem:[#allocation2 + $0x70] sm:$0xff] %v801_v14  ;;  %v761_v18 = vadd.f32 %v760_v15, %v605_v48  ;;  %v793_v19 = vadd.f32 %v792_v16, %v645_v58 }
 0x2f6   :  { %v1031_v20 = vpop.f32.mrf.mxu0  ;;  %v1039_v21 = vpop.f32.mrf.mxu1 }
 0x2f7   :  { %811 = vst [vmem:[#allocation2 + $0x20] sm:$0xff] %v761_v18  ;;  %819 = vst [vmem:[#allocation2 + $0x60] sm:$0xff] %v793_v19  ;;  %v772_v22 = vadd.f32 %v1031_v20, %v620_v51  ;;  %v804_v23 = vadd.f32 %v1039_v21, %v660_v17 }
 0x2f8   :  { %v763_v24 = vpop.f32.mrf.mxu0  ;;  %v795_v25 = vpop.f32.mrf.mxu1 }
 0x2f9   :  { %814 = vst [vmem:[#allocation2 + $0x38] sm:$0xff] %v772_v22  ;;  %822 = vst [vmem:[#allocation2 + $0x78] sm:$0xff] %v804_v23  ;;  %v764_v26 = vadd.f32 %v763_v24, %v610_v49  ;;  %v796_v27 = vadd.f32 %v795_v25, %v650_v3 }
 0x2fb   :  { %812 = vst [vmem:[#allocation2 + $0x28] sm:$0xff] %v764_v26  ;;  %820 = vst [vmem:[#allocation2 + $0x68] sm:$0xff] %v796_v27 }
 0x2fc   :  { %1098 = shalt.err (!%p1095_p4)
}
 0x2fd   :  { %s1112_s22 = smov 128   ;;  %s1113_s23 = smov 8  }
 0x2fe   :  { %834 = dma.vmem_to_hbm [thread:$0]  %s829_s21, 2048, %s1335_s5, [#allocation3], %s1112_s22, %s1112_s22, %s1113_s23  }
 0x2ff   :  { %1107 = dma.done.wait [#allocation3], 2048  }
 0x300   :  { %1108 = vsyncadd [#allocation3], 4294965248 }
 0x301   :  { %838 = vsyncpa [#allocation3], 1 }

</bundles_post_ra>
